<compile_context>
chip_gen: v7x
topology: tpu7x:2x2x1
jax: 0.10.0
libtpu: 0.0.40
codegen_flags: <defaults>
</compile_context>

<pallas_src>
import functools

import jax
import jax.numpy as jnp
from jax.experimental import pallas as pl
from jax.experimental.pallas import tpu as pltpu


_CLAMP_MIN = 1e-7
_CLAMP_MAX = 1.0


def _nrce_partial_kernel(x_ref, y_ref, part_ref, *, n_total, tile_n, approx_recip):
    """Per-tile partials of sum(softmax(x) * log(clamp(y))) over a row tile.

    Writes a lane-dense, (8,128)-aligned (8, C) output block whose sublane 0
    carries the per-lane partial sums; sublanes 1..7 are zero.
    """
    i = pl.program_id(0)

    # (tile_n, C) tiles; class axis C is last -> maps to TPU lanes.
    # TODO(synk): for small C (<~32 classes) most lanes are padding; a packed
    # multiple-samples-per-vreg-row path would restore lane utilization.
    x = x_ref[...].astype(jnp.float32)
    y = y_ref[...].astype(jnp.float32)

    # Numerically stable softmax over the class (lane) axis. Reciprocal-multiply
    # instead of per-element divide; approx=True lowers to the EUP vrcp slot.
    x_max = jnp.max(x, axis=-1, keepdims=True)
    ex = jnp.exp(x - x_max)
    denom = jnp.sum(ex, axis=-1, keepdims=True)
    sm = ex * pl.reciprocal(denom, approx=approx_recip)

    # clamp(softmax(x), 1e-7, 1) * log(clamp(y, 1e-7, 1))
    sm = jnp.clip(sm, _CLAMP_MIN, _CLAMP_MAX)
    yc = jnp.clip(y, _CLAMP_MIN, _CLAMP_MAX)
    prod = sm * jnp.log(yc)                                     # (tile_n, C)

    # Mask rows beyond the true N (padded last tile). Select semantics keep
    # NaNs from padded garbage out of the sum (do NOT turn into multiply).
    row = jax.lax.broadcasted_iota(jnp.int32, prod.shape, 0) + i * tile_n
    prod = jnp.where(row < n_total, prod, 0.0)

    # Per-lane partial sum over the row (sublane) axis -> (1, C).
    part = jnp.sum(prod, axis=0, keepdims=True)

    # Emit an aligned (8, C) block: sublane 0 = partial, other sublanes 0.
    sub = jax.lax.broadcasted_iota(jnp.int32, part_ref.shape, 0)
    part_ref[...] = jnp.where(sub == 0, part, 0.0)


def normalized_reverse_cross_entropy(x, y, scale=1.0, tile_n=None,
                                     approx_recip=True, cast_to_bf16=False):
    """x: (N, C) logits, y: (N, C) target probabilities. Returns scalar f32.

    The kernel is HBM-bandwidth bound: pass bf16/fp16 inputs (or set
    cast_to_bf16=True when precision allows) to halve streaming traffic; the
    kernel upcasts to f32 internally.
    """
    assert x.shape == y.shape and x.ndim == 2
    n, c = x.shape

    if cast_to_bf16:
        x = x.astype(jnp.bfloat16)
        y = y.astype(jnp.bfloat16)

    in_itemsize = max(jnp.dtype(x.dtype).itemsize, jnp.dtype(y.dtype).itemsize)
    # dtype-aware sublane packing: 8 rows (f32), 16 (bf16/fp16), 32 (int8/fp8).
    sublane = {4: 8, 2: 16, 1: 32}.get(in_itemsize, 8)

    if tile_n is None:
        # Per-row VMEM: 2 inputs x 2 pipeline buffers + ~6 f32 temporaries
        # (upcasts, ex, sm, log(yc), product). Budget kept conservative so it
        # fits v5e (16/128 MiB scoped/physical) and v7x (32/64 MiB) VMEM.
        budget = 12 * 1024 * 1024
        per_row = 2 * 2 * c * in_itemsize + 6 * c * 4
        tile_n = max(sublane, min(n, budget // max(per_row, 1)))
        tile_n = (tile_n // sublane) * sublane
        tile_n = int(min(max(tile_n, sublane), 2048))
    else:
        tile_n = int(max(sublane, ((tile_n + sublane - 1) // sublane) * sublane))

    n_tiles = pl.cdiv(n, tile_n)

    kernel = functools.partial(
        _nrce_partial_kernel, n_total=n, tile_n=tile_n, approx_recip=approx_recip)

    cost = pl.CostEstimate(
        flops=6 * n * c,
        transcendentals=2 * n * c,                       # exp + log per element
        bytes_accessed=2 * n * c * in_itemsize + n_tiles * 8 * c * 4,
    )

    partials = pl.pallas_call(
        kernel,
        out_shape=jax.ShapeDtypeStruct((n_tiles * 8, c), jnp.float32),
        grid_spec=pltpu.PrefetchScalarGridSpec(
            num_scalar_prefetch=0,
            grid=(n_tiles,),
            in_specs=[
                pl.BlockSpec((tile_n, c), lambda i: (i, 0)),
                pl.BlockSpec((tile_n, c), lambda i: (i, 0)),
            ],
            out_specs=pl.BlockSpec((8, c), lambda i: (i, 0)),
        ),
        compiler_params=pltpu.CompilerParams(
            # No carried state: fully parallel grid -> uses both TensorCores on
            # v7x (megacore); harmless on single-TC v5e/v6e.
            dimension_semantics=("parallel",),
            vmem_limit_bytes=32 << 20,
        ),
        cost_estimate=cost,
    )(x, y)

    # Final reduction + normalization in the wrapper (better f32 accuracy than
    # a sequentially carried scalar; keeps the grid embarrassingly parallel).
    total = jnp.sum(partials, dtype=jnp.float32)
    return (scale * 0.25 / n) * (-total)


if __name__ == "__main__":
    key = jax.random.PRNGKey(0)
    kx, ky = jax.random.split(key)

    # Small, lane-aligned class axis; N chosen so the row tiling produces
    # multiple grid steps and a partial (masked) last tile.
    N, C = 20, 128
    x = jax.random.normal(kx, (N, C), dtype=jnp.float32)
    y_logits = jax.random.normal(ky, (N, C), dtype=jnp.float32)
    y = jax.nn.softmax(y_logits, axis=1)     # soft-label target distribution

    scale = 1.0

    def ref_fn(xr, yr):
        xs = jnp.clip(jax.nn.softmax(xr.astype(jnp.float32), axis=1), 1e-7, 1.0)
        yc = jnp.clip(yr.astype(jnp.float32), 1e-7, 1.0)
        return scale * 0.25 * jnp.mean(-jnp.sum(xs * jnp.log(yc), axis=1))

    ref = ref_fn(x, y)

    # 1) Exact-reciprocal path, forced small tile (several grid steps + masked
    #    partial last tile).
    out = jax.block_until_ready(
        normalized_reverse_cross_entropy(x, y, scale=scale, tile_n=8,
                                         approx_recip=False))
    assert jnp.allclose(out, ref, rtol=1e-5, atol=1e-6), (out, ref)

    # 2) Default fast path: auto-tiled + approx (EUP) reciprocal.
    out2 = jax.block_until_ready(
        normalized_reverse_cross_entropy(x, y, scale=scale))
    assert jnp.allclose(out2, ref, rtol=2e-2, atol=1e-3), (out2, ref)

    # 3) bf16 streaming path (halves HBM traffic); compare against a reference
    #    evaluated on the bf16-rounded inputs.
    xb = x.astype(jnp.bfloat16)
    yb = y.astype(jnp.bfloat16)
    ref_b = ref_fn(xb, yb)
    out3 = jax.block_until_ready(
        normalized_reverse_cross_entropy(xb, yb, scale=scale, approx_recip=False))
    assert jnp.allclose(out3, ref_b, rtol=1e-5, atol=1e-6), (out3, ref_b)

    print("KERNEL_OK")
</pallas_src>

<mosaic_0001>
module attributes {stable_mosaic.version = 11 : i64} {
  func.func @_nrce_partial_kernel(%arg0: i32, %arg1: memref<8x128xf32, #tpu.memory_space<vmem>>, %arg2: memref<8x128xf32, #tpu.memory_space<vmem>>, %arg3: memref<8x128xf32, #tpu.memory_space<vmem>>) attributes {dimension_semantics = [#tpu.dimension_semantics<parallel>], iteration_bounds = array<i64: 3>, scalar_prefetch = 0 : i64, scratch_operands = 0 : i64, tpu.core_type = #tpu.core_type<tc>, window_params = [{transform_indices = @transform_0, window_bounds = array<i64: 8, 128>}, {transform_indices = @transform_1, window_bounds = array<i64: 8, 128>}, {transform_indices = @transform_2, window_bounds = array<i64: 8, 128>}]} {
    %c0 = arith.constant 0 : index
    %c0_0 = arith.constant 0 : index
    %0 = vector.load %arg1[%c0, %c0_0] : memref<8x128xf32, #tpu.memory_space<vmem>>, vector<8x128xf32>
    %c0_1 = arith.constant 0 : index
    %c0_2 = arith.constant 0 : index
    %1 = vector.load %arg2[%c0_1, %c0_2] : memref<8x128xf32, #tpu.memory_space<vmem>>, vector<8x128xf32>
    %cst = arith.constant dense<0xFF800000> : vector<8xf32>
    %2 = vector.multi_reduction <maximumf>, %0, %cst [1] : vector<8x128xf32> to vector<8xf32>
    %3 = vector.shape_cast %2 : vector<8xf32> to vector<8x1xf32>
    %4 = vector.broadcast %3 : vector<8x1xf32> to vector<8x128xf32>
    %5 = arith.subf %0, %4 : vector<8x128xf32>
    %6 = math.exp %5 : vector<8x128xf32>
    %cst_3 = arith.constant dense<0.000000e+00> : vector<8xf32>
    %7 = vector.multi_reduction <add>, %6, %cst_3 [1] : vector<8x128xf32> to vector<8xf32>
    %8 = vector.shape_cast %7 : vector<8xf32> to vector<8x1xf32>
    %9 = tpu.reciprocal %8 : vector<8x1xf32> -> vector<8x1xf32>
    %10 = vector.broadcast %9 : vector<8x1xf32> to vector<8x128xf32>
    %11 = arith.mulf %6, %10 : vector<8x128xf32>
    %cst_4 = arith.constant 1.000000e-07 : f32
    %cst_5 = arith.constant 1.000000e+00 : f32
    %12 = vector.broadcast %cst_4 : f32 to vector<8x128xf32>
    %13 = arith.maximumf %12, %11 : vector<8x128xf32>
    %14 = vector.broadcast %cst_5 : f32 to vector<8x128xf32>
    %15 = arith.minimumf %14, %13 : vector<8x128xf32>
    %cst_6 = arith.constant 1.000000e-07 : f32
    %cst_7 = arith.constant 1.000000e+00 : f32
    %16 = vector.broadcast %cst_6 : f32 to vector<8x128xf32>
    %17 = arith.maximumf %16, %1 : vector<8x128xf32>
    %18 = vector.broadcast %cst_7 : f32 to vector<8x128xf32>
    %19 = arith.minimumf %18, %17 : vector<8x128xf32>
    %20 = math.log %19 : vector<8x128xf32>
    %21 = arith.mulf %15, %20 : vector<8x128xf32>
    %22 = tpu.iota {dimensions = array<i32: 0>} : vector<8x128xi32>
    %c8_i32 = arith.constant 8 : i32
    %23 = arith.muli %arg0, %c8_i32 : i32
    %24 = vector.broadcast %23 : i32 to vector<8x128xi32>
    %25 = arith.addi %22, %24 : vector<8x128xi32>
    %c20_i32 = arith.constant 20 : i32
    %26 = vector.broadcast %c20_i32 : i32 to vector<8x128xi32>
    %27 = arith.cmpi slt, %25, %26 : vector<8x128xi32>
    %cst_8 = arith.constant 0.000000e+00 : f32
    %28 = vector.broadcast %cst_8 : f32 to vector<8x128xf32>
    %29 = arith.select %27, %21, %28 : vector<8x128xi1>, vector<8x128xf32>
    %cst_9 = arith.constant dense<0.000000e+00> : vector<128xf32>
    %30 = vector.multi_reduction <add>, %29, %cst_9 [0] : vector<8x128xf32> to vector<128xf32>
    %31 = vector.shape_cast %30 : vector<128xf32> to vector<1x128xf32>
    %32 = tpu.iota {dimensions = array<i32: 0>} : vector<8x128xi32>
    %c0_i32 = arith.constant 0 : i32
    %33 = vector.broadcast %c0_i32 : i32 to vector<8x128xi32>
    %34 = arith.cmpi eq, %32, %33 : vector<8x128xi32>
    %cst_10 = arith.constant 0.000000e+00 : f32
    %35 = vector.shape_cast %31 : vector<1x128xf32> to vector<1x128xf32>
    %36 = vector.broadcast %35 : vector<1x128xf32> to vector<8x128xf32>
    %37 = vector.broadcast %cst_10 : f32 to vector<8x128xf32>
    %38 = arith.select %34, %36, %37 : vector<8x128xi1>, vector<8x128xf32>
    %c0_11 = arith.constant 0 : index
    %c0_12 = arith.constant 0 : index
    %39 = vector.load %arg3[%c0_11, %c0_12] : memref<8x128xf32, #tpu.memory_space<vmem>>, vector<8x128xf32>
    tpu.vector_store %arg3[%c0_11, %c0_12], %38 {strides = array<i32>} : memref<8x128xf32, #tpu.memory_space<vmem>>, vector<8x128xf32>,
    return
  }
  func.func @transform_0(%arg0: i32) -> (i32, i32) {
    %c0_i32 = arith.constant 0 : i32
    %c0_i32_0 = arith.constant 0 : i32
    return %arg0, %c0_i32 : i32, i32
  }
  func.func @transform_1(%arg0: i32) -> (i32, i32) {
    %c0_i32 = arith.constant 0 : i32
    %c0_i32_0 = arith.constant 0 : i32
    return %arg0, %c0_i32 : i32, i32
  }
  func.func @transform_2(%arg0: i32) -> (i32, i32) {
    %c0_i32 = arith.constant 0 : i32
    %c0_i32_0 = arith.constant 0 : i32
    return %arg0, %c0_i32 : i32, i32
  }
}

</mosaic_0001>

<bundles_post_ra>
// kernel: tpu_custom_call.1
= control target key start
LH: loop header
LB: loop body
LE: loop exit
PB: predicated region body
PF: predicated region fallthrough
CT: control target
= control target key end

     0   :  { %7 = vsyncpa [#allocation3], 0  ;;  %s773_s0 = inlined_call_operand.hbm [shape: f32[20,128], index: 0, kind: input, shape index: {}]   ;;  %s774_s1 = inlined_call_operand.hbm [shape: f32[20,128], index: 1, kind: input, shape index: {}]   ;;  %s775_s2 = inlined_call_operand.hbm [shape: f32[24,128], index: 2, kind: output, shape index: {}]  }
   0x1   :  { %9 = vsyncpa [#allocation3 + $0x1], 0 }
   0x2   :  { %10 = vsyncpa [#allocation6], 0 }
   0x3   :  { %12 = vsyncpa [#allocation6 + $0x1], 0 }
   0x4   :  { %13 = vsyncpa [#allocation4], 0 }
   0x5   :  { %15 = vsyncpa [#allocation4 + $0x1], 0  ;;  %s560_s9 = smov 0   ;;  %s562_s10 = smov 0  }
   0x6   :  { %s564_s11 = smov 0   ;;  %s566_s12 = smov 0  }
   0x7 LB: > { %s581_s13 = sadd.s32 4294967295, %s540_s12   ;;  %s337_s14 = sadd.s32 4294967294, %s540_s12   ;;  %s540_s12 = sphi %s566_s12, %s793_s12   ;;  %s536_s11 = sphi %s564_s11, %s792_s11   ;;  %s532_s10 = sphi %s562_s10, %s791_s10   ;;  %s528_s9 = sphi %s560_s9, %s790_s9  }
   0x8   : > { %s585_s15 = sadd.s32 1, %s540_s12   ;;  %s28_s16 = sadd.s32 1, %s536_s11 }
   0x9   : > { %s25_s17 = ssub.s32 %s540_s12, %s585_s15  ;;  %p35_p0 = scmp.ne.s32.totalorder %s536_s11, %s532_s10 }
   0xa   : > { %p26_p1 = scmp.eq.s32.totalorder %s25_s17, 0  ;;  %p36_p2 = scmp.eq.s32.totalorder %s540_s12, 0 }
   0xb   : > { %p41_p3 = scmp.ne.s32.totalorder %s532_s10, %s528_s9  ;;  %p42_p4 = scmp.eq.s32.totalorder %s581_s13, 0 }
   0xc   : > { %s597_s18 = scalar_select %p26_p1, %s536_s11, %s28_s16  }
   0xd   : > { %p599_p5 = por %p36_p2, %p35_p0  ;;  %p603_p6 = por %p42_p4, %p41_p3 }
   0xe   : > { %p91_p7 = scmp.eq.s32.totalorder %s581_s13, 2  ;;  %p97_p8 = scmp.eq.s32.totalorder %s337_s14, 2 }
   0xf   : > { %s779_s20 = scalar_select %p603_p6, 1, 0 }
  0x10   : > { %p370_p9 = scmp.lt.s32.totalorder %s540_s12, 3  ;;  %p609_p10 = por %p91_p7, %p35_p0 }
  0x11   : > { %p613_p11 = por %p97_p8, %p41_p3  ;;  %s618_s23 = sand.u32 1, %s536_s11  }
  0x12   : > { %s780_s21 = scalar_select %p609_p10, 1, 0 }
  0x13   : > { %s781_s22 = scalar_select %p613_p11, 1, 0 }
  0x14   : > { %s341_s24 = sshll.u32 %s540_s12, 7  ;;  %s340_s25 = sshll.u32 %s618_s23, 3 }
  0x15   : > { %s627_s28 = scalar_lea.hbm %s773_s0, %s341_s24  ;;  %s121_s29 = scalar_lea.vmem [#allocation2], %s340_s25 }
  0x16   : > { %s128_s30 = sshll.u32 %s121_s29, 4  ;;  %p633_p12 = pnand %p370_p9, %p599_p5  ;;  %s637_s30 = int_to_ptr.vmem [resolvable:$true] %s128_s30 }
  0x17   : > { %s118_s4 = scalar_lea.sflag [#allocation3], %s618_s23  ;;  %s410_s5 = scalar_lea.hbm %s627_s28, 128 }
  0x18   : > { %p411_p1 = scmp.ne.s32.totalorder %s627_s28, %s410_s5  ;;  %p412_p2 = pneg %p633_p12 }
  0x19   : > { %s415_s8 = scalar_lea.hbm %s773_s0, 384  ;;  %p416_p5 = scmp.lt.u32.totalorder %s627_s28, %s773_s0 }
  0x1a   : > { %p413_p3 = pnand %p412_p2, %p411_p1  ;;  %p417_p7 = scmp.lt.u32.totalorder %s415_s8, %s410_s5 }
  0x1b   : > { %p419_p9 = scmp.lt.u32.totalorder %s410_s5, %s627_s28 }
  0x1c   : > { %p414_p4 = pneg %p413_p3  ;;  %p418_p8 = por %p417_p7, %p416_p5 }
  0x1e   : > { %p420_p13 = por %p419_p9, %p418_p8 }
  0x20   : > { %p421_p0 = pnand %p420_p13, %p414_p4 }
  0x22   : > { %424 = shalt.err (!%p421_p0)
}
  0x23   : > { %s425_s17 = scalar_lea.vmem %s637_s30, 128  ;;  %s542_s19 = smov [#allocation2]  }
  0x24   : > { %p426_p1 = scmp.ne.s32.totalorder %s637_s30, %s425_s17  ;;  %s430_s26 = sshll.u32 %s542_s19, 4  ;;  %s431_s26 = int_to_ptr.vmem [resolvable:$false] %s430_s26 }
  0x25   : > { %s432_s27 = scalar_lea.vmem %s431_s26, 256  ;;  %p433_p10 = scmp.lt.s32.totalorder %s637_s30, %s431_s26 }
  0x26   : > { %p428_p3 = pnand %p426_p1, %p412_p2  ;;  %p434_p5 = scmp.lt.s32.totalorder %s432_s27, %s425_s17 }
  0x28   : > { %p429_p11 = pneg %p428_p3  ;;  %p435_p7 = por %p434_p5, %p433_p10 }
  0x2a   : > { %p436_p8 = pnand %p435_p7, %p429_p11 }
  0x2c   : > { %439 = shalt.err (!%p436_p8)
}
  0x2d   : > { %362 = dma.hbm_to_vmem [thread:$0]  (!%p633_p12), %s627_s28, 128, %s637_s30, %s118_s4  }
  0x2e   : > { %p783_p13 = scmp.lt.s32.totalorder %s540_s12, 4  ;;  %p784_p0 = scmp.ge.s32.totalorder %s540_s12, 1 }
  0x2f   : > { %s680_s7 = scalar_lea.hbm %s774_s1, %s341_s24  ;;  %s139_s8 = scalar_lea.vmem [#allocation5], %s340_s25 }
  0x30   : > { %p671_p4 = pnand %p784_p0, %p783_p13  ;;  %s146_s14 = sshll.u32 %s139_s8, 4  ;;  %s147_s14 = int_to_ptr.vmem [resolvable:$true] %s146_s14 }
  0x31   : > { %s136_s28 = scalar_lea.sflag [#allocation6], %s618_s23  ;;  %s440_s30 = scalar_lea.hbm %s680_s7, 128 }
  0x32   : > { %s785_s29 = scalar_select %p671_p4, 1, 0 }
  0x33   : > { %p441_p10 = scmp.ne.s32.totalorder %s680_s7, %s440_s30  ;;  %s445_s24 = scalar_lea.hbm %s774_s1, 384 }
  0x34   : > { %p446_p1 = scmp.lt.u32.totalorder %s680_s7, %s774_s1  ;;  %p447_p3 = scmp.lt.u32.totalorder %s445_s24, %s440_s30 }
  0x35   : > { %p443_p11 = pnand %p441_p10, %p412_p2  ;;  %p449_p7 = scmp.lt.u32.totalorder %s440_s30, %s680_s7 }
  0x36   : > { %p448_p5 = por %p447_p3, %p446_p1 }
  0x37   : > { %p444_p9 = pneg %p443_p11 }
  0x38   : > { %p450_p8 = por %p449_p7, %p448_p5 }
  0x3a   : > { %p451_p13 = pnand %p450_p8, %p444_p9 }
  0x3c   : > { %454 = shalt.err (!%p451_p13)
}
  0x3d   : > { %s455_s23 = scalar_lea.vmem %s147_s14, 128  ;;  %s543_s25 = smov [#allocation5]  }
  0x3e   : > { %p456_p0 = scmp.ne.s32.totalorder %s147_s14, %s455_s23  ;;  %s460_s26 = sshll.u32 %s543_s25, 4  ;;  %s461_s26 = int_to_ptr.vmem [resolvable:$false] %s460_s26 }
  0x3f   : > { %s462_s27 = scalar_lea.vmem %s461_s26, 256  ;;  %p463_p6 = scmp.lt.s32.totalorder %s147_s14, %s461_s26 }
  0x40   : > { %p458_p10 = pnand %p456_p0, %p412_p2  ;;  %p464_p4 = scmp.lt.s32.totalorder %s462_s27, %s455_s23 }
  0x42   : > { %p459_p11 = pneg %p458_p10  ;;  %p465_p1 = por %p464_p4, %p463_p6 }
  0x44   : > { %p466_p3 = pnand %p465_p1, %p459_p11 }
  0x46   : > { %469 = shalt.err (!%p466_p3)
}
  0x47   : > { %365 = dma.hbm_to_vmem [thread:$0]  (!%p633_p12), %s680_s7, 128, %s147_s14, %s136_s28  }
  0x48   : > { %p786_p9 = scmp.ne.s32.totalorder %s785_s29, 0 }
  0x49   : > { %s707_s5 = sand.u32 (!%p786_p9), 1, %s532_s10   ;;  %p787_p6 = scmp.ne.s32.totalorder (!%p786_p9), %s779_s20, 0 }
  0x4a   : > { %155 = sbr.rel (%p786_p9) target bundleno = 431 (0x1af), region = 28  ;;  %s710_s6 = sshll.u32 (!%p786_p9), %s707_s5, 3 }
  0x4b   : > { %s158_s8 = scalar_lea.sflag (!%p786_p9), [#allocation3], %s707_s5  ;;  %s161_s30 = scalar_lea.vmem (!%p786_p9), [#allocation2], %s710_s6 }
  0x51   : > { %515 = dma.done.wait (%p787_p6), %s158_s8, 128  }
  0x52   : > { %517 = vsyncadd (%p787_p6), %s158_s8, 4294967168  ;;  %s167_s3 = scalar_lea.sflag [#allocation6], %s707_s5  ;;  %s170_s29 = scalar_lea.vmem [#allocation5], %s710_s6 }
  0x53   : > { %519 = dma.done.wait (%p787_p6), %s167_s3, 128  }
  0x54   : > { %521 = vsyncadd (%p787_p6), %s167_s3, 4294967168  ;;  %v196_v0 = vld [vmem:[%s161_s30] sm:$0xff]  ;;  %v197_v5 = vld [vmem:[%s170_s29] sm:$0xff]  ;;  %v214_v9 = vlaneseq  ;;  %s348_s7 = sshll.u32 %s581_s13, 3  ;;  %s350_s20 = sshll.u32 %s581_s13, 7 }
  0x55   : > { %198 = vmax.xlane.f32.xlu0 %v196_v0  ;;  %v209_v6 = vmax.f32 %v197_v5, 1e-07  ;;  %v217_v12 = vstv %s348_s7  ;;  %s195_s14 = scalar_lea.vmem [#allocation7], %s710_s6  ;;  %s730_s24 = scalar_lea.hbm %s775_s2, %s350_s20 }
  0x56   : > { %v215_v10 = vshrl.u32 %v214_v9, 7  ;;  %s244_s28 = sshll.u32 %s195_s14, 4  ;;  %s231_s17 = scalar_lea.sflag [#allocation4], %s707_s5  ;;  %s732_s28 = int_to_ptr.vmem [resolvable:$true] %s244_s28 }
  0x57   : > { %v210_v7 = vmin.f32 %v209_v6, 1.0  ;;  %s470_s19 = scalar_lea.vmem %s732_s28, 128  ;;  %p788_p2 = scmp.ne.s32.totalorder %s780_s21, 0 }
  0x58   : > { %v218_v15 = vadd.s32 %v217_v12, %v215_v10  ;;  %vm227_vm1 = vcmp.eq.s32.totalorder %v215_v10, 0  ;;  %p471_p12 = scmp.ne.s32.totalorder %s732_s28, %s470_s19  ;;  %s544_s13 = smov [#allocation7]  }
  0x59   : > { %s474_s23 = sshll.u32 %s544_s13, 4  ;;  %s475_s23 = int_to_ptr.vmem [resolvable:$false] %s474_s23 }
  0x5a   : > { %vm219_vm0 = vcmp.lt.s32.totalorder %v218_v15, 20  ;;  %p472_p4 = pnand %p471_p12, %p788_p2  ;;  %s476_s25 = scalar_lea.vmem %s475_s23, 256 }
  0x5b   : > { %p477_p7 = scmp.lt.s32.totalorder %s732_s28, %s475_s23  ;;  %p478_p8 = scmp.lt.s32.totalorder %s476_s25, %s470_s19 }
  0x5c   : > { %p473_p5 = pneg %p472_p4 }
  0x5d   : > { %p479_p13 = por %p478_p8, %p477_p7 }
  0x5f   : > { %p480_p0 = pnand %p479_p13, %p473_p5 }
  0xe2   : > { %v199_v1 = vpop.xlane.xlu0 %198 }
  0xe3   : > { %v200_v2 = vsub.f32 %v196_v0, %v199_v1 }
  0xe5   : > { %v201_v3 = vmul.f32 1.442695, %v200_v2 }
  0xe7   : > { %404 = vpow2.f32 %v201_v3 }
  0xe8   : > { %406 = vlog2.f32 %v210_v7 }
  0xf1   : > { %v405_v4 = vpop.eup %404 }
  0xf2   : > { %203 = vadd.xlane.f32.xlu0 %v405_v4  ;;  %v407_v11 = vpop.eup %406 }
  0xf3   : > { %v212_v16 = vmul.f32 0.6931472, %v407_v11 }
 0x17f   : > { %v204_v8 = vpop.xlane.xlu0 %203 }
 0x180   : > { %408 = vrcp.f32 %v204_v8 }
 0x18a   : > { %v409_v13 = vpop.eup %408 }
 0x18b   : > { %v206_v14 = vmul.f32 %v409_v13, %v405_v4 }
 0x18d   : > { %v207_v17 = vmax.f32 %v206_v14, 1e-07 }
 0x18f   : > { %v208_v18 = vmin.f32 %v207_v17, 1.0 }
 0x191   : > { %v213_v19 = vmul.f32 %v212_v16, %v208_v18 }
 0x193   : > { %v220_v20 = vsel %vm219_vm0, %v213_v19, 0.0 }
 0x194   : > { %v221_v21 = vrot.slane %v220_v20, 4 }
 0x196   : > { %v222_v22 = vadd.f32 %v221_v21, %v220_v20 }
 0x198   : > { %v223_v23 = vrot.slane %v222_v22, 2 }
 0x19a   : > { %v224_v24 = vadd.f32 %v223_v23, %v222_v22 }
 0x19c   : > { %v225_v25 = vrot.slane %v224_v24, 1 }
 0x19e   : > { %v226_v26 = vadd.f32 %v225_v25, %v224_v24 }
 0x1a0   : > { %v228_v27 = vsel %vm227_vm1, %v226_v26, 0.0 }
 0x1a1   : > { %229 = vst [vmem:[%s195_s14] sm:$0xff] %v228_v27 }
 0x1a2   : > { %483 = shalt.err (!%p480_p0)
}
 0x1a3   : > { %s484_s26 = scalar_lea.hbm %s730_s24, 128  ;;  %s488_s6 = scalar_lea.hbm %s775_s2, 384 }
 0x1a4   : > { %p485_p10 = scmp.ne.s32.totalorder %s730_s24, %s484_s26  ;;  %p489_p3 = scmp.lt.u32.totalorder %s730_s24, %s775_s2 }
 0x1a5   : > { %p490_p9 = scmp.lt.u32.totalorder %s488_s6, %s484_s26  ;;  %p492_p12 = scmp.lt.u32.totalorder %s484_s26, %s730_s24 }
 0x1a6   : > { %p486_p11 = pnand %p485_p10, %p788_p2 }
 0x1a7   : > { %p491_p6 = por %p490_p9, %p489_p3 }
 0x1a8   : > { %p487_p1 = pneg %p486_p11 }
 0x1a9   : > { %p493_p4 = por %p492_p12, %p491_p6 }
 0x1ab   : > { %p494_p5 = pnand %p493_p4, %p487_p1 }
 0x1ad   : > { %497 = shalt.err (!%p494_p5)
}
 0x1ae   : > { %357 = dma.vmem_to_hbm [thread:$0]  (%p788_p2), %s732_s28, 128, %s730_s24, %s231_s17  }
 0x1af PF: > { %p371_p7 = scmp.ge.s32.totalorder %s540_s12, 2  ;;  %s256_s3 = sand.u32 1, %s528_s9  }
 0x1b0   : > { %p789_p8 = scmp.ne.s32.totalorder %s781_s22, 0  ;;  %s257_s29 = scalar_lea.sflag [#allocation4], %s256_s3 }
 0x1b2   : > { %p367_p13 = pnand %p371_p7, %p789_p8 }
 0x1b4   : > { %523 = dma.done.wait (!%p367_p13), %s257_s29, 128  }
 0x1b5   : > { %525 = vsyncadd (!%p367_p13), %s257_s29, 4294967168  ;;  %p18_p0 = scmp.ge.s32.totalorder %s585_s15, 5   ;;  %s790_s9 = smov %s532_s10 }
 0x1b6   : > { %s791_s10 = smov %s536_s11  ;;  %s792_s11 = smov %s597_s18 }
 0x1b7   : > { %s793_s12 = smov %s585_s15  ;;  %20 = sbr.rel (!%p18_p0) target bundleno = 7 (0x7), region = 86 }
 0x1be   :  { %262 = vsyncpa [#allocation3], 1 }
 0x1bf   :  { %264 = vsyncpa [#allocation3 + $0x1], 1 }
 0x1c0   :  { %265 = vsyncpa [#allocation6], 1 }
 0x1c1   :  { %267 = vsyncpa [#allocation6 + $0x1], 1 }
 0x1c2   :  { %268 = vsyncpa [#allocation4], 1 }
 0x1c3   :  { %270 = vsyncpa [#allocation4 + $0x1], 1 }

</bundles_post_ra>
